<compile_context>
chip_gen: v5e
topology: v5e:2x2
jax: 0.10.0
libtpu: 0.0.40
codegen_flags: <defaults>
</compile_context>

<pallas_src>
import jax
import jax.numpy as jnp
from jax.experimental import pallas as pl
from jax.experimental.pallas import tpu as pltpu

LANE = 128
MESSAGE_SIZE = 32
HIDDEN_SIZE = 128
VMEM_LIMIT = 32 * 1024 * 1024  # safe on v5e/v6e/v7x; tiles below use << this


def _round_up(v, m):
    return (v + m - 1) // m * m


def _pad2d(a, rows, cols):
    out = jnp.zeros((rows, cols), a.dtype)
    return out.at[: a.shape[0], : a.shape[1]].set(a)


# ---------------------------------------------------------------------------
# Pallas kernels
# ---------------------------------------------------------------------------
def edge_mlp_kernel(n0_ref, n1_ref, ea_ref,
                    w1a_ref, w1b_ref, w1c_ref, b1_ref,
                    msg_ref):
    """Edge MLP: ReLU([n0 | n1 | ea] @ W1 + b1); concat split into 3 matmuls.
    Elementwise math stays f32 (v5e VPU has no bf16); stored bf16 lane-dense."""
    msg = (jnp.dot(n0_ref[...], w1a_ref[...], preferred_element_type=jnp.float32)
           + jnp.dot(n1_ref[...], w1b_ref[...], preferred_element_type=jnp.float32)
           + jnp.dot(ea_ref[...], w1c_ref[...], preferred_element_type=jnp.float32)
           + b1_ref[...])
    msg_ref[...] = jnp.maximum(msg, 0.0).astype(msg_ref.dtype)        # (TE, Mp)


def scatter_node_kernel(x_ref, msg_ref, idx0_ref,
                        w2a_ref, w2b_ref, b2_ref,
                        out_ref, acc_ref):
    """scatter_sum of precomputed messages over node0 ids + node MLP finalize."""
    i = pl.program_id(0)                 # node-tile index ("parallel")
    e = pl.program_id(1)                 # edge-tile index (reduction, "arbitrary")

    @pl.when(e == 0)
    def _():
        acc_ref[...] = jnp.zeros_like(acc_ref)

    # one-hot (TN, TE) in bf16 (exactly 0/1) x bf16 msg, f32 accumulation on MXU.
    tn = acc_ref.shape[0]
    te = idx0_ref.shape[1]
    node_ids = jax.lax.broadcasted_iota(jnp.int32, (tn, te), 0) + i * tn
    onehot = (node_ids == idx0_ref[...]).astype(jnp.bfloat16)         # (TN, TE)
    acc_ref[...] += jnp.dot(onehot, msg_ref[...],
                            preferred_element_type=jnp.float32)       # (TN, Mp)

    @pl.when(e == pl.num_programs(1) - 1)
    def _():
        # node MLP: ReLU([x | sums] @ W2 + b2), concat split into 2 matmuls.
        h = (jnp.dot(x_ref[...], w2a_ref[...], preferred_element_type=jnp.float32)
             + jnp.dot(acc_ref[...], w2b_ref[...], preferred_element_type=jnp.float32)
             + b2_ref[...])
        out_ref[...] = jnp.maximum(h, 0.0)                             # (TN, Fp)


def head_kernel(x_ref, batch_ref,
                wg1_ref, bg1_ref, wg2_ref, bg2_ref,
                out_ref, sum_ref, cnt_ref):
    """scatter_mean over the graph batch vector + 2-layer graph MLP."""
    n = pl.program_id(0)

    @pl.when(n == 0)
    def _():
        sum_ref[...] = jnp.zeros_like(sum_ref)
        cnt_ref[...] = jnp.zeros_like(cnt_ref)

    g_pad = sum_ref.shape[0]
    tn = batch_ref.shape[1]
    g_iota = jax.lax.broadcasted_iota(jnp.int32, (g_pad, tn), 0)
    onehot = (g_iota == batch_ref[...]).astype(jnp.float32)            # (Gp, TN)
    sum_ref[...] += jnp.dot(onehot, x_ref[...], preferred_element_type=jnp.float32)
    cnt_ref[...] = cnt_ref[...] + jnp.sum(onehot, axis=-1, keepdims=True)

    @pl.when(n == pl.num_programs(0) - 1)
    def _():
        means = sum_ref[...] / jnp.maximum(cnt_ref[...], 1.0)          # (Gp, Fp)
        h = jnp.maximum(
            jnp.dot(means, wg1_ref[...], preferred_element_type=jnp.float32)
            + bg1_ref[...], 0.0)                                       # (Gp, H)
        out_ref[...] = (jnp.dot(h, wg2_ref[...], preferred_element_type=jnp.float32)
                        + bg2_ref[...])                                # (Gp, OUTp)


# ---------------------------------------------------------------------------
# pallas_call wrappers
# ---------------------------------------------------------------------------
def edge_messages(n0, n1, ea_p, p, *, tile_e):
    e_pad, f_pad = n0.shape
    fe_pad = ea_p.shape[1]
    m_pad = p["b1"].shape[1]
    grid = (e_pad // tile_e,)

    flops = int(2 * e_pad * (2 * f_pad + fe_pad) * m_pad)
    bytes_accessed = int(4 * (n0.size + n1.size + ea_p.size
                              + p["w1a"].size + p["w1b"].size + p["w1c"].size
                              + p["b1"].size) + 2 * e_pad * m_pad)

    return pl.pallas_call(
        edge_mlp_kernel,
        out_shape=jax.ShapeDtypeStruct((e_pad, m_pad), jnp.bfloat16),
        grid_spec=pltpu.PrefetchScalarGridSpec(
            num_scalar_prefetch=0,
            grid=grid,
            in_specs=[
                pl.BlockSpec((tile_e, f_pad), lambda e: (e, 0)),   # n0 = x[idx0]
                pl.BlockSpec((tile_e, f_pad), lambda e: (e, 0)),   # n1 = x[idx1]
                pl.BlockSpec((tile_e, fe_pad), lambda e: (e, 0)),  # edge_attr
                pl.BlockSpec((f_pad, m_pad), lambda e: (0, 0)),    # w1a (resident)
                pl.BlockSpec((f_pad, m_pad), lambda e: (0, 0)),    # w1b
                pl.BlockSpec((fe_pad, m_pad), lambda e: (0, 0)),   # w1c
                pl.BlockSpec((1, m_pad), lambda e: (0, 0)),        # b1
            ],
            out_specs=pl.BlockSpec((tile_e, m_pad), lambda e: (e, 0))),
        compiler_params=pltpu.CompilerParams(
            dimension_semantics=("parallel",),
            vmem_limit_bytes=VMEM_LIMIT),
        cost_estimate=pl.CostEstimate(flops=flops, transcendentals=0,
                                      bytes_accessed=bytes_accessed),
    )(n0, n1, ea_p, p["w1a"], p["w1b"], p["w1c"], p["b1"])


def scatter_node_update(x_p, msg, idx0_s, p, *, tile_n, tile_e):
    n_pad, f_pad = x_p.shape
    e_pad, m_pad = msg.shape
    grid = (n_pad // tile_n, e_pad // tile_e)

    flops = int(2 * n_pad * e_pad * m_pad
                + 2 * n_pad * (f_pad + m_pad) * f_pad)
    bytes_accessed = int(4 * (x_p.size + idx0_s.size + n_pad * f_pad
                              + p["w2a"].size + p["w2b"].size + p["b2"].size)
                         + 2 * msg.size * grid[0])

    return pl.pallas_call(
        scatter_node_kernel,
        out_shape=jax.ShapeDtypeStruct((n_pad, f_pad), jnp.float32),
        grid_spec=pltpu.PrefetchScalarGridSpec(
            num_scalar_prefetch=0,
            grid=grid,
            in_specs=[
                pl.BlockSpec((tile_n, f_pad), lambda i, e: (i, 0)),  # x (resident over e)
                pl.BlockSpec((tile_e, m_pad), lambda i, e: (e, 0)),  # messages (bf16)
                pl.BlockSpec((1, tile_e), lambda i, e: (0, e)),      # idx0 (scatter ids)
                pl.BlockSpec((f_pad, f_pad), lambda i, e: (0, 0)),   # w2a (resident)
                pl.BlockSpec((m_pad, f_pad), lambda i, e: (0, 0)),   # w2b
                pl.BlockSpec((1, f_pad), lambda i, e: (0, 0)),       # b2
            ],
            out_specs=pl.BlockSpec((tile_n, f_pad), lambda i, e: (i, 0)),
            scratch_shapes=[pltpu.VMEM((tile_n, m_pad), jnp.float32)]),
        compiler_params=pltpu.CompilerParams(
            dimension_semantics=("parallel", "arbitrary"),
            vmem_limit_bytes=VMEM_LIMIT),
        cost_estimate=pl.CostEstimate(flops=flops, transcendentals=0,
                                      bytes_accessed=bytes_accessed),
    )(x_p, msg, idx0_s, p["w2a"], p["w2b"], p["b2"])


def graph_head(x_p, batch_p, g_pad, p, *, tile_n):
    n_pad, f_pad = x_p.shape
    hidden = p["wg1"].shape[1]
    out_pad = p["wg2"].shape[1]
    grid = (n_pad // tile_n,)

    flops = int(2 * g_pad * n_pad * f_pad
                + 2 * g_pad * f_pad * hidden + 2 * g_pad * hidden * out_pad)
    bytes_accessed = int(4 * (x_p.size + batch_p.size + g_pad * out_pad
                              + sum(w.size for w in p.values())))

    return pl.pallas_call(
        head_kernel,
        out_shape=jax.ShapeDtypeStruct((g_pad, out_pad), jnp.float32),
        grid_spec=pltpu.PrefetchScalarGridSpec(
            num_scalar_prefetch=0,
            grid=grid,
            in_specs=[
                pl.BlockSpec((tile_n, f_pad), lambda n: (n, 0)),      # node features
                pl.BlockSpec((1, tile_n), lambda n: (0, n)),          # batch ids
                pl.BlockSpec((f_pad, hidden), lambda n: (0, 0)),      # wg1 (resident)
                pl.BlockSpec((1, hidden), lambda n: (0, 0)),          # bg1
                pl.BlockSpec((hidden, out_pad), lambda n: (0, 0)),    # wg2
                pl.BlockSpec((1, out_pad), lambda n: (0, 0)),         # bg2
            ],
            out_specs=pl.BlockSpec((g_pad, out_pad), lambda n: (0, 0)),
            scratch_shapes=[pltpu.VMEM((g_pad, f_pad), jnp.float32),   # sums
                            pltpu.VMEM((g_pad, f_pad), jnp.float32)]), # counts
        compiler_params=pltpu.CompilerParams(
            dimension_semantics=("arbitrary",),
            vmem_limit_bytes=VMEM_LIMIT),
        cost_estimate=pl.CostEstimate(flops=flops, transcendentals=0,
                                      bytes_accessed=bytes_accessed),
    )(x_p, batch_p, p["wg1"], p["bg1"], p["wg2"], p["bg2"])


# ---------------------------------------------------------------------------
# Parameter padding (zero rows/cols/bias -> exact results after slicing)
# ---------------------------------------------------------------------------
def _pad_conv_params(p, f_pad, fe_pad, m_pad):
    return {
        "w1a": _pad2d(p["w1a"], f_pad, m_pad),
        "w1b": _pad2d(p["w1b"], f_pad, m_pad),
        "w1c": _pad2d(p["w1c"], fe_pad, m_pad),
        "b1": _pad2d(p["b1"], 1, m_pad),
        "w2a": _pad2d(p["w2a"], f_pad, f_pad),
        "w2b": _pad2d(p["w2b"], m_pad, f_pad),
        "b2": _pad2d(p["b2"], 1, f_pad),
    }


def _pad_head_params(p, f_pad, out_pad):
    hidden = p["wg1"].shape[1]
    return {
        "wg1": _pad2d(p["wg1"], f_pad, hidden),
        "bg1": _pad2d(p["bg1"], 1, hidden),
        "wg2": _pad2d(p["wg2"], hidden, out_pad),
        "bg2": _pad2d(p["bg2"], 1, out_pad),
    }


# ---------------------------------------------------------------------------
# Full forward
# ---------------------------------------------------------------------------
def vanilla_network_forward(x, edge_index, edge_attr, batch, num_graphs, params,
                            *, tile_n=128, tile_e=256):
    n, f = x.shape
    e, fe = edge_attr.shape
    out_dim = params["head"]["wg2"].shape[1]

    n_pad = _round_up(n, tile_n)
    e_pad = _round_up(e, tile_e)
    f_pad = _round_up(f, LANE)
    fe_pad = _round_up(fe, LANE)
    m_pad = _round_up(MESSAGE_SIZE, LANE)
    out_pad = _round_up(out_dim, LANE)
    g_pad = _round_up(num_graphs, 8)

    idx0 = edge_index[0].astype(jnp.int32)
    idx1 = edge_index[1].astype(jnp.int32)

    x_p = _pad2d(x, n_pad, f_pad)
    ea_p = _pad2d(edge_attr, e_pad, fe_pad)
    # gather indices: pad with 0 (valid row; padded edges never get scattered)
    idx0_g = jnp.zeros((e_pad,), jnp.int32).at[:e].set(idx0)
    idx1_g = jnp.zeros((e_pad,), jnp.int32).at[:e].set(idx1)
    # scatter indices: pad with -1 so the one-hot excludes padded edges
    idx0_s = jnp.full((1, e_pad), -1, jnp.int32).at[0, :e].set(idx0)
    # batch ids: pad with -1 so padded node rows never contribute to the mean
    batch_p = jnp.full((1, n_pad), -1, jnp.int32).at[0, :n].set(batch.astype(jnp.int32))

    conv1_p = _pad_conv_params(params["conv1"], f_pad, fe_pad, m_pad)
    conv2_p = _pad_conv_params(params["conv2"], f_pad, fe_pad, m_pad)
    head_p = _pad_head_params(params["head"], f_pad, out_pad)

    def conv(h, p):
        # TODO(synk): move these row gathers in-kernel (scalar-prefetched
        # indices + manual DMA gather) to drop the (E, F) HBM materialization.
        n0 = h[idx0_g]
        n1 = h[idx1_g]
        msg = edge_messages(n0, n1, ea_p, p, tile_e=tile_e)
        return scatter_node_update(h, msg, idx0_s, p, tile_n=tile_n, tile_e=tile_e)

    h1 = conv(x_p, conv1_p)
    h2 = conv(h1, conv2_p)
    z_pad = graph_head(h2, batch_p, g_pad, head_p, tile_n=tile_n)
    return z_pad[:num_graphs, :out_dim]


# ---------------------------------------------------------------------------
# Deterministic parameter init (PyTorch nn.Linear style: U(-1/sqrt(in), 1/sqrt(in)))
# ---------------------------------------------------------------------------
def _linear_init(key, fan_in, fan_out):
    kw, kb = jax.random.split(key)
    bound = 1.0 / jnp.sqrt(jnp.float32(fan_in))
    w = jax.random.uniform(kw, (fan_in, fan_out), jnp.float32, -bound, bound)
    b = jax.random.uniform(kb, (1, fan_out), jnp.float32, -bound, bound)
    return w, b


def make_conv_params(key, n_feat, e_feat, message_size=MESSAGE_SIZE):
    k1, k2 = jax.random.split(key)
    edge_in = 2 * n_feat + e_feat
    w1, b1 = _linear_init(k1, edge_in, message_size)
    w2, b2 = _linear_init(k2, n_feat + message_size, n_feat)
    return {
        "w1a": w1[:n_feat], "w1b": w1[n_feat:2 * n_feat], "w1c": w1[2 * n_feat:],
        "b1": b1,
        "w2a": w2[:n_feat], "w2b": w2[n_feat:], "b2": b2,
    }


def make_head_params(key, n_feat, out_dim, hidden=HIDDEN_SIZE):
    k1, k2 = jax.random.split(key)
    wg1, bg1 = _linear_init(k1, n_feat, hidden)
    wg2, bg2 = _linear_init(k2, hidden, out_dim)
    return {"wg1": wg1, "bg1": bg1, "wg2": wg2, "bg2": bg2}


# ---------------------------------------------------------------------------
# Pure-JAX reference (for correctness check)
# ---------------------------------------------------------------------------
def _ref_conv(x, idx0, idx1, ea, p):
    w1 = jnp.concatenate([p["w1a"], p["w1b"], p["w1c"]], axis=0)
    w2 = jnp.concatenate([p["w2a"], p["w2b"]], axis=0)
    msg_in = jnp.concatenate([x[idx0], x[idx1], ea], axis=1)
    msg = jax.nn.relu(msg_in @ w1 + p["b1"])
    sums = jax.ops.segment_sum(msg, idx0, num_segments=x.shape[0])
    return jax.nn.relu(jnp.concatenate([x, sums], axis=1) @ w2 + p["b2"])


def _ref_forward(x, edge_index, ea, batch, num_graphs, params):
    idx0, idx1 = edge_index[0], edge_index[1]
    h1 = _ref_conv(x, idx0, idx1, ea, params["conv1"])
    h2 = _ref_conv(h1, idx0, idx1, ea, params["conv2"])
    sums = jax.ops.segment_sum(h2, batch, num_segments=num_graphs)
    cnts = jax.ops.segment_sum(jnp.ones((x.shape[0], 1)), batch, num_segments=num_graphs)
    means = sums / jnp.maximum(cnts, 1.0)
    p = params["head"]
    h = jax.nn.relu(means @ p["wg1"] + p["bg1"])
    return h @ p["wg2"] + p["bg2"]


# ---------------------------------------------------------------------------
if __name__ == "__main__":
    key = jax.random.PRNGKey(0)
    k_x, k_e, k_i0, k_i1, kp1, kp2, kph = jax.random.split(key, 7)

    # small synthetic graph batch
    N_NODES, N_EDGES, N_FEAT, E_FEAT = 16, 40, 8, 4
    OUT_DIM, N_GRAPHS = 3, 2

    x = jax.random.normal(k_x, (N_NODES, N_FEAT), jnp.float32)
    edge_attr = jax.random.normal(k_e, (N_EDGES, E_FEAT), jnp.float32)
    idx0 = jax.random.randint(k_i0, (N_EDGES,), 0, N_NODES, jnp.int32)
    idx1 = jax.random.randint(k_i1, (N_EDGES,), 0, N_NODES, jnp.int32)
    edge_index = jnp.stack([idx0, idx1], axis=0)                  # (2, E)
    batch = jnp.concatenate([jnp.zeros(N_NODES // 2, jnp.int32),
                             jnp.ones(N_NODES - N_NODES // 2, jnp.int32)])

    params = {
        "conv1": make_conv_params(kp1, N_FEAT, E_FEAT),
        "conv2": make_conv_params(kp2, N_FEAT, E_FEAT),
        "head": make_head_params(kph, N_FEAT, OUT_DIM),
    }

    z = vanilla_network_forward(x, edge_index, edge_attr, batch, N_GRAPHS, params)
    z = jax.block_until_ready(z)

    z_ref = _ref_forward(x, edge_index, edge_attr, batch, N_GRAPHS, params)
    assert z.shape == (N_GRAPHS, OUT_DIM)
    # bf16 is used only for the one-hot scatter matmul operands -> small rounding
    assert jnp.allclose(z, z_ref, atol=5e-2, rtol=5e-2), (z, z_ref)

    print("KERNEL_OK")
</pallas_src>

<mosaic_0001>
module attributes {stable_mosaic.version = 11 : i64} {
  func.func @edge_mlp_kernel(%arg0: i32, %arg1: memref<256x128xf32, #tpu.memory_space<vmem>>, %arg2: memref<256x128xf32, #tpu.memory_space<vmem>>, %arg3: memref<256x128xf32, #tpu.memory_space<vmem>>, %arg4: memref<128x128xf32, #tpu.memory_space<vmem>>, %arg5: memref<128x128xf32, #tpu.memory_space<vmem>>, %arg6: memref<128x128xf32, #tpu.memory_space<vmem>>, %arg7: memref<1x128xf32, #tpu.memory_space<vmem>>, %arg8: memref<256x128xbf16, #tpu.memory_space<vmem>>) attributes {dimension_semantics = [#tpu.dimension_semantics<parallel>], iteration_bounds = array<i64: 1>, scalar_prefetch = 0 : i64, scratch_operands = 0 : i64, tpu.core_type = #tpu.core_type<tc>, window_params = [{transform_indices = @transform_0, window_bounds = array<i64: 256, 128>}, {transform_indices = @transform_1, window_bounds = array<i64: 256, 128>}, {transform_indices = @transform_2, window_bounds = array<i64: 256, 128>}, {pipeline_mode = #tpu.pipeline_mode<synchronous>, transform_indices = @transform_3, window_bounds = array<i64: 128, 128>}, {pipeline_mode = #tpu.pipeline_mode<synchronous>, transform_indices = @transform_4, window_bounds = array<i64: 128, 128>}, {pipeline_mode = #tpu.pipeline_mode<synchronous>, transform_indices = @transform_5, window_bounds = array<i64: 128, 128>}, {pipeline_mode = #tpu.pipeline_mode<synchronous>, transform_indices = @transform_6, window_bounds = array<i64: 1, 128>}, {transform_indices = @transform_7, window_bounds = array<i64: 256, 128>}]} {
    %c0 = arith.constant 0 : index
    %c0_0 = arith.constant 0 : index
    %0 = vector.load %arg1[%c0, %c0_0] : memref<256x128xf32, #tpu.memory_space<vmem>>, vector<256x128xf32>
    %c0_1 = arith.constant 0 : index
    %c0_2 = arith.constant 0 : index
    %1 = vector.load %arg4[%c0_1, %c0_2] : memref<128x128xf32, #tpu.memory_space<vmem>>, vector<128x128xf32>
    %cst = arith.constant dense<0.000000e+00> : vector<256x128xf32>
    %2 = tpu.matmul %0, %1, %cst {dimension_numbers = #tpu.dot_dimension_numbers<[1], [0], [0], [1], [0, 0, 1, 1], [], []>} : vector<256x128xf32>, vector<128x128xf32>, vector<256x128xf32> -> vector<256x128xf32>
    %c0_3 = arith.constant 0 : index
    %c0_4 = arith.constant 0 : index
    %3 = vector.load %arg2[%c0_3, %c0_4] : memref<256x128xf32, #tpu.memory_space<vmem>>, vector<256x128xf32>
    %c0_5 = arith.constant 0 : index
    %c0_6 = arith.constant 0 : index
    %4 = vector.load %arg5[%c0_5, %c0_6] : memref<128x128xf32, #tpu.memory_space<vmem>>, vector<128x128xf32>
    %cst_7 = arith.constant dense<0.000000e+00> : vector<256x128xf32>
    %5 = tpu.matmul %3, %4, %cst_7 {dimension_numbers = #tpu.dot_dimension_numbers<[1], [0], [0], [1], [0, 0, 1, 1], [], []>} : vector<256x128xf32>, vector<128x128xf32>, vector<256x128xf32> -> vector<256x128xf32>
    %6 = arith.addf %2, %5 : vector<256x128xf32>
    %c0_8 = arith.constant 0 : index
    %c0_9 = arith.constant 0 : index
    %7 = vector.load %arg3[%c0_8, %c0_9] : memref<256x128xf32, #tpu.memory_space<vmem>>, vector<256x128xf32>
    %c0_10 = arith.constant 0 : index
    %c0_11 = arith.constant 0 : index
    %8 = vector.load %arg6[%c0_10, %c0_11] : memref<128x128xf32, #tpu.memory_space<vmem>>, vector<128x128xf32>
    %cst_12 = arith.constant dense<0.000000e+00> : vector<256x128xf32>
    %9 = tpu.matmul %7, %8, %cst_12 {dimension_numbers = #tpu.dot_dimension_numbers<[1], [0], [0], [1], [0, 0, 1, 1], [], []>} : vector<256x128xf32>, vector<128x128xf32>, vector<256x128xf32> -> vector<256x128xf32>
    %10 = arith.addf %6, %9 : vector<256x128xf32>
    %c0_13 = arith.constant 0 : index
    %c0_14 = arith.constant 0 : index
    %11 = vector.load %arg7[%c0_13, %c0_14] : memref<1x128xf32, #tpu.memory_space<vmem>>, vector<1x128xf32>
    %12 = vector.broadcast %11 : vector<1x128xf32> to vector<256x128xf32>
    %13 = arith.addf %10, %12 : vector<256x128xf32>
    %cst_15 = arith.constant 0.000000e+00 : f32
    %14 = vector.broadcast %cst_15 : f32 to vector<256x128xf32>
    %15 = arith.maximumf %13, %14 : vector<256x128xf32>
    %16 = arith.truncf %15 : vector<256x128xf32> to vector<256x128xbf16>
    %c0_16 = arith.constant 0 : index
    %c0_17 = arith.constant 0 : index
    %17 = vector.load %arg8[%c0_16, %c0_17] : memref<256x128xbf16, #tpu.memory_space<vmem>>, vector<256x128xbf16>
    tpu.vector_store %arg8[%c0_16, %c0_17], %16 {strides = array<i32>} : memref<256x128xbf16, #tpu.memory_space<vmem>>, vector<256x128xbf16>,
    return
  }
  func.func @transform_0(%arg0: i32) -> (i32, i32) {
    %c0_i32 = arith.constant 0 : i32
    %c0_i32_0 = arith.constant 0 : i32
    return %arg0, %c0_i32 : i32, i32
  }
  func.func @transform_1(%arg0: i32) -> (i32, i32) {
    %c0_i32 = arith.constant 0 : i32
    %c0_i32_0 = arith.constant 0 : i32
    return %arg0, %c0_i32 : i32, i32
  }
  func.func @transform_2(%arg0: i32) -> (i32, i32) {
    %c0_i32 = arith.constant 0 : i32
    %c0_i32_0 = arith.constant 0 : i32
    return %arg0, %c0_i32 : i32, i32
  }
  func.func @transform_3(%arg0: i32) -> (i32, i32) {
    %c0_i32 = arith.constant 0 : i32
    %c0_i32_0 = arith.constant 0 : i32
    %c0_i32_1 = arith.constant 0 : i32
    return %c0_i32, %c0_i32_0 : i32, i32
  }
  func.func @transform_4(%arg0: i32) -> (i32, i32) {
    %c0_i32 = arith.constant 0 : i32
    %c0_i32_0 = arith.constant 0 : i32
    %c0_i32_1 = arith.constant 0 : i32
    return %c0_i32, %c0_i32_0 : i32, i32
  }
  func.func @transform_5(%arg0: i32) -> (i32, i32) {
    %c0_i32 = arith.constant 0 : i32
    %c0_i32_0 = arith.constant 0 : i32
    %c0_i32_1 = arith.constant 0 : i32
    return %c0_i32, %c0_i32_0 : i32, i32
  }
  func.func @transform_6(%arg0: i32) -> (i32, i32) {
    %c0_i32 = arith.constant 0 : i32
    %c0_i32_0 = arith.constant 0 : i32
    %c0_i32_1 = arith.constant 0 : i32
    return %c0_i32, %c0_i32_0 : i32, i32
  }
  func.func @transform_7(%arg0: i32) -> (i32, i32) {
    %c0_i32 = arith.constant 0 : i32
    %c0_i32_0 = arith.constant 0 : i32
    return %arg0, %c0_i32 : i32, i32
  }
}

</mosaic_0001>

<bundles_post_ra>
// kernel: tpu_custom_call.1
= control target key start
LH: loop header
LB: loop body
LE: loop exit
PB: predicated region body
PF: predicated region fallthrough
CT: control target
= control target key end

     0   :  { %12 = vsyncpa [#allocation3], 0  ;;  %s1418_s0 = inlined_call_operand.hbm [shape: f32[256,128], index: 0, kind: input, shape index: {}]   ;;  %s1419_s1 = inlined_call_operand.hbm [shape: f32[256,128], index: 1, kind: input, shape index: {}]   ;;  %s1420_s2 = inlined_call_operand.hbm [shape: f32[256,128], index: 2, kind: input, shape index: {}]   ;;  %s1421_s3 = inlined_call_operand.hbm [shape: f32[128,128], index: 3, kind: input, shape index: {}]   ;;  %s1422_s4 = inlined_call_operand.hbm [shape: f32[128,128], index: 4, kind: input, shape index: {}]   ;;  %s1423_s5 = inlined_call_operand.hbm [shape: f32[128,128], index: 5, kind: input, shape index: {}]   ;;  %s1424_s6 = inlined_call_operand.vmem [shape: f32[1,128], index: 6, kind: input, shape index: {}]   ;;  %s1425_s7 = inlined_call_operand.hbm [shape: bf16[256,128], index: 7, kind: output, shape index: {}]  }
   0x1   :  { %13 = vsyncpa [#allocation6], 0 }
   0x2   :  { %14 = vsyncpa [#allocation9], 0 }
   0x3   :  { %15 = vsyncpa [#allocation12], 0 }
   0x4   :  { %16 = vsyncpa [#allocation4], 0  ;;  %s34_s26 = sshll.u32 %s1419_s1, 4  ;;  %s1123_s27 = smov [#allocation5]   ;;  %s35_s26 = int_to_ptr.hbm [resolvable:$true] %s34_s26 }
   0x5   :  { %s36_s28 = sshll.u32 %s1123_s27, 4  ;;  %s60_s8 = sshll.u32 %s1421_s3, 4  ;;  %s37_s28 = int_to_ptr.vmem [resolvable:$true] %s36_s28  ;;  %s61_s8 = int_to_ptr.hbm [resolvable:$true] %s60_s8 }
   0x6   :  { %s1124_s9 = smov 128   ;;  %s1125_s10 = smov 8  }
   0x7   :  { %42 = dma.hbm_to_vmem [thread:$0]  %s35_s26, 4096, %s37_s28, [#allocation6], %s1124_s9, %s1124_s9, %s1125_s10  }
   0x8   :  { %s1126_s11 = smov [#allocation8]   ;;  %s21_s1 = sshll.u32 %s1418_s0, 4  ;;  %s22_s1 = int_to_ptr.hbm [resolvable:$true] %s21_s1 }
   0x9   :  { %s62_s12 = sshll.u32 %s1126_s11, 4  ;;  %s47_s16 = sshll.u32 %s1420_s2, 4  ;;  %s63_s12 = int_to_ptr.vmem [resolvable:$true] %s62_s12  ;;  %s48_s16 = int_to_ptr.hbm [resolvable:$true] %s47_s16 }
   0xa   :  { %68 = dma.hbm_to_vmem [thread:$0]  %s61_s8, 2048, %s63_s12, [#allocation9], %s1124_s9, %s1124_s9, %s1125_s10  }
   0xb   :  { %s1127_s17 = smov [#allocation2]   ;;  %s1128_s19 = smov [#allocation7]  }
   0xc   :  { %s23_s18 = sshll.u32 %s1127_s17, 4  ;;  %s49_s0 = sshll.u32 %s1128_s19, 4  ;;  %s24_s18 = int_to_ptr.vmem [resolvable:$true] %s23_s18  ;;  %s50_s0 = int_to_ptr.vmem [resolvable:$true] %s49_s0 }
   0xd   :  { %29 = dma.hbm_to_vmem [thread:$0]  %s22_s1, 4096, %s24_s18, [#allocation3], %s1124_s9, %s1124_s9, %s1125_s10  }
   0xe   :  { %s73_s22 = sshll.u32 %s1422_s4, 4  ;;  %s86_s24 = sshll.u32 %s1423_s5, 4  ;;  %s74_s22 = int_to_ptr.hbm [resolvable:$true] %s73_s22  ;;  %s87_s24 = int_to_ptr.hbm [resolvable:$true] %s86_s24 }
   0xf   :  { %55 = dma.hbm_to_vmem [thread:$0]  %s48_s16, 4096, %s50_s0, [#allocation6], %s1124_s9, %s1124_s9, %s1125_s10  }
  0x10   :  { %s1129_s25 = smov [#allocation10]   ;;  %s1130_s27 = smov [#allocation11]  }
  0x11   :  { %s75_s26 = sshll.u32 %s1129_s25, 4  ;;  %s88_s4 = sshll.u32 %s1130_s27, 4  ;;  %s76_s26 = int_to_ptr.vmem [resolvable:$true] %s75_s26  ;;  %s89_s4 = int_to_ptr.vmem [resolvable:$true] %s88_s4 }
  0x12   :  { %81 = dma.hbm_to_vmem [thread:$0]  %s74_s22, 2048, %s76_s26, [#allocation9], %s1124_s9, %s1124_s9, %s1125_s10  }
  0x13   :  { %94 = dma.hbm_to_vmem [thread:$0]  %s87_s24, 2048, %s89_s4, [#allocation12], %s1124_s9, %s1124_s9, %s1125_s10  }
  0x14   :  { %1113 = dma.done.wait [#allocation3], 4096  }
  0x15   :  { %1114 = vsyncadd [#allocation3], 4294963200 }
  0x16   :  { %1115 = dma.done.wait [#allocation6], 8192  }
  0x17   :  { %1116 = vsyncadd [#allocation6], 4294959104 }
  0x18   :  { %1117 = dma.done.wait [#allocation9], 4096  }
  0x19   :  { %1118 = vsyncadd [#allocation9], 4294963200 }
  0x1a   :  { %1119 = dma.done.wait [#allocation12], 2048  }
  0x1b   :  { %1120 = vsyncadd [#allocation12], 4294965248  ;;  %v216_v0 = vld [vmem:[#allocation10 + $0x78] sm:$0xff]  ;;  %v215_v2 = vld [vmem:[#allocation10 + $0x70] sm:$0xff]  ;;  %s774_s9 = sshll.u32 %s1425_s7, 4  ;;  %s1132_s10 = smov 64   ;;  %s775_s9 = int_to_ptr.hbm [resolvable:$true] %s774_s9 }
  0x1c   :  { %v1210_v1 = vld [vmem:[#allocation11 + $0x78] sm:$0xff]  ;;  %885 = vmatpush.msra.mxu3 %v216_v0  ;;  %v1213_v3 = vld [vmem:[#allocation11 + $0x70] sm:$0xff]  ;;  %217 = vmatpush.msra.mxu0 %v216_v0  ;;  %v214_v5 = vld [vmem:[#allocation10 + $0x68] sm:$0xff]  ;;  %s1133_s11 = smov 4  }
  0x1d   :  { %491 = vmatpush.msra.mxu2 %v1210_v1  ;;  %v1215_v4 = vld [vmem:[#allocation8 + $0x78] sm:$0xff]  ;;  %v1218_v6 = vld [vmem:[#allocation11 + $0x68] sm:$0xff]  ;;  %v1220_v7 = vld [vmem:[#allocation8 + $0x70] sm:$0xff] }
  0x1e   :  { %330 = vmatpush.msra.mxu1 %v1215_v4  ;;  %886 = vmatpush.msra.mxu3 %v215_v2  ;;  %v1223_v8 = vld [vmem:[#allocation8 + $0x68] sm:$0xff]  ;;  %v213_v9 = vld [vmem:[#allocation10 + $0x60] sm:$0xff]  ;;  %v212_v12 = vld [vmem:[#allocation10 + $0x58] sm:$0xff] }
  0x1f   :  { %492 = vmatpush.msra.mxu2 %v1213_v3  ;;  %218 = vmatpush.msra.mxu0 %v215_v2  ;;  %v1226_v10 = vld [vmem:[#allocation11 + $0x60] sm:$0xff]  ;;  %v1232_v13 = vld [vmem:[#allocation11 + $0x58] sm:$0xff]  ;;  %v211_v15 = vld [vmem:[#allocation10 + $0x50] sm:$0xff] }
  0x20   :  { %331 = vmatpush.msra.mxu1 %v1220_v7  ;;  %887 = vmatpush.msra.mxu3 %v214_v5  ;;  %v1229_v11 = vld [vmem:[#allocation8 + $0x60] sm:$0xff]  ;;  %v1235_v14 = vld [vmem:[#allocation8 + $0x58] sm:$0xff]  ;;  %v1238_v16 = vld [vmem:[#allocation11 + $0x50] sm:$0xff] }
  0x21   :  { %493 = vmatpush.msra.mxu2 %v1218_v6  ;;  %219 = vmatpush.msra.mxu0 %v214_v5  ;;  %v1241_v17 = vld [vmem:[#allocation8 + $0x50] sm:$0xff]  ;;  %v210_v18 = vld [vmem:[#allocation10 + $0x48] sm:$0xff]  ;;  %v209_v21 = vld [vmem:[#allocation10 + $0x40] sm:$0xff] }
  0x22   :  { %332 = vmatpush.msra.mxu1 %v1223_v8  ;;  %888 = vmatpush.msra.mxu3 %v213_v9  ;;  %v1244_v19 = vld [vmem:[#allocation11 + $0x48] sm:$0xff]  ;;  %v1250_v22 = vld [vmem:[#allocation11 + $0x40] sm:$0xff]  ;;  %v208_v24 = vld [vmem:[#allocation10 + $0x38] sm:$0xff] }
  0x23   :  { %494 = vmatpush.msra.mxu2 %v1226_v10  ;;  %220 = vmatpush.msra.mxu0 %v213_v9  ;;  %v1247_v20 = vld [vmem:[#allocation8 + $0x48] sm:$0xff]  ;;  %v1253_v23 = vld [vmem:[#allocation8 + $0x40] sm:$0xff]  ;;  %v1256_v25 = vld [vmem:[#allocation11 + $0x38] sm:$0xff] }
  0x24   :  { %333 = vmatpush.msra.mxu1 %v1229_v11  ;;  %889 = vmatpush.msra.mxu3 %v212_v12  ;;  %v1259_v26 = vld [vmem:[#allocation8 + $0x38] sm:$0xff]  ;;  %v207_v27 = vld [vmem:[#allocation10 + $0x30] sm:$0xff]  ;;  %v206_v30 = vld [vmem:[#allocation10 + $0x28] sm:$0xff] }
  0x25   :  { %495 = vmatpush.msra.mxu2 %v1232_v13  ;;  %221 = vmatpush.msra.mxu0 %v212_v12  ;;  %v1262_v28 = vld [vmem:[#allocation11 + $0x30] sm:$0xff]  ;;  %v1268_v31 = vld [vmem:[#allocation11 + $0x28] sm:$0xff]  ;;  %v205_v33 = vld [vmem:[#allocation10 + $0x20] sm:$0xff] }
  0x26   :  { %334 = vmatpush.msra.mxu1 %v1235_v14  ;;  %890 = vmatpush.msra.mxu3 %v211_v15  ;;  %v1265_v29 = vld [vmem:[#allocation8 + $0x30] sm:$0xff]  ;;  %v1271_v32 = vld [vmem:[#allocation8 + $0x28] sm:$0xff]  ;;  %v1274_v34 = vld [vmem:[#allocation11 + $0x20] sm:$0xff] }
  0x27   :  { %496 = vmatpush.msra.mxu2 %v1238_v16  ;;  %222 = vmatpush.msra.mxu0 %v211_v15  ;;  %v1277_v35 = vld [vmem:[#allocation8 + $0x20] sm:$0xff]  ;;  %v204_v36 = vld [vmem:[#allocation10 + $0x18] sm:$0xff]  ;;  %v203_v39 = vld [vmem:[#allocation10 + $0x10] sm:$0xff] }
  0x28   :  { %335 = vmatpush.msra.mxu1 %v1241_v17  ;;  %891 = vmatpush.msra.mxu3 %v210_v18  ;;  %v1280_v37 = vld [vmem:[#allocation11 + $0x18] sm:$0xff]  ;;  %v1286_v40 = vld [vmem:[#allocation11 + $0x10] sm:$0xff]  ;;  %v202_v42 = vld [vmem:[#allocation10 + $0x8] sm:$0xff] }
  0x29   :  { %497 = vmatpush.msra.mxu2 %v1244_v19  ;;  %223 = vmatpush.msra.mxu0 %v210_v18  ;;  %v1283_v38 = vld [vmem:[#allocation8 + $0x18] sm:$0xff]  ;;  %v1289_v41 = vld [vmem:[#allocation8 + $0x10] sm:$0xff]  ;;  %v1292_v43 = vld [vmem:[#allocation11 + $0x8] sm:$0xff] }
  0x2a   :  { %336 = vmatpush.msra.mxu1 %v1247_v20  ;;  %892 = vmatpush.msra.mxu3 %v209_v21  ;;  %v154_v44 = vld [vmem:[#allocation8 + $0x8] sm:$0xff]  ;;  %v201_v45 = vld [vmem:[#allocation10] sm:$0xff]  ;;  %v195_v56 = vld [vmem:[#allocation5 + $0xd0] sm:$0xff] }
  0x2b   :  { %498 = vmatpush.msra.mxu2 %v1250_v22  ;;  %224 = vmatpush.msra.mxu0 %v209_v21  ;;  %v1296_v46 = vld [vmem:[#allocation11] sm:$0xff]  ;;  %v194_v52 = vld [vmem:[#allocation5 + $0xc8] sm:$0xff]  ;;  %v445_v57 = vld [vmem:[#allocation7 + $0x10] sm:$0xff] }
  0x2c   :  { %337 = vmatpush.msra.mxu1 %v1253_v23  ;;  %893 = vmatpush.msra.mxu3 %v208_v24  ;;  %v193_v47 = vld [vmem:[#allocation5 + $0xc0] sm:$0xff]  ;;  %v444_v53 = vld [vmem:[#allocation7 + $0x8] sm:$0xff]  ;;  %v171_v58 = vld [vmem:[#allocation5 + $0x10] sm:$0xff] }
  0x2d   :  { %499 = vmatpush.msra.mxu2 %v1256_v25  ;;  %225 = vmatpush.msra.mxu0 %v208_v24  ;;  %v443_v48 = vld [vmem:[#allocation7] sm:$0xff]  ;;  %v170_v54 = vld [vmem:[#allocation5 + $0x8] sm:$0xff]  ;;  %v123_v59 = vld [vmem:[#allocation2 + $0x10] sm:$0xff] }
  0x2e   :  { %338 = vmatpush.msra.mxu1 %v1259_v26  ;;  %894 = vmatpush.msra.mxu3 %v207_v27  ;;  %v153_v49 = vld [vmem:[#allocation8] sm:$0xff]  ;;  %v122_v55 = vld [vmem:[#allocation2 + $0x8] sm:$0xff]  ;;  %v196_v60 = vld [vmem:[#allocation5 + $0xd8] sm:$0xff] }
  0x2f   :  { %500 = vmatpush.msra.mxu2 %v1262_v28  ;;  %226 = vmatpush.msra.mxu0 %v207_v27  ;;  %v169_v50 = vld [vmem:[#allocation5] sm:$0xff]  ;;  %v446_v61 = vld [vmem:[#allocation7 + $0x18] sm:$0xff]  ;;  %v174_v9 = vld [vmem:[#allocation5 + $0x28] sm:$0xff] }
  0x30   :  { %339 = vmatpush.msra.mxu1 %v1265_v29  ;;  %895 = vmatpush.msra.mxu3 %v206_v30  ;;  %v121_v51 = vld [vmem:[#allocation2] sm:$0xff]  ;;  %v172_v62 = vld [vmem:[#allocation5 + $0x18] sm:$0xff]  ;;  %v449_v12 = vld [vmem:[#allocation7 + $0x30] sm:$0xff] }
  0x31   :  { %501 = vmatpush.msra.mxu2 %v1268_v31  ;;  %227 = vmatpush.msra.mxu0 %v206_v30  ;;  %v124_v63 = vld [vmem:[#allocation2 + $0x18] sm:$0xff]  ;;  %v197_v0 = vld [vmem:[#allocation5 + $0xe0] sm:$0xff]  ;;  %v452_v21 = vld [vmem:[#allocation7 + $0x48] sm:$0xff] }
  0x32   :  { %340 = vmatpush.msra.mxu1 %v1271_v32  ;;  %896 = vmatpush.msra.mxu3 %v205_v33  ;;  %v447_v2 = vld [vmem:[#allocation7 + $0x20] sm:$0xff]  ;;  %v128_v15 = vld [vmem:[#allocation2 + $0x38] sm:$0xff]  ;;  %v147_v24 = vld [vmem:[#allocation2 + $0xd0] sm:$0xff] }
  0x33   :  { %502 = vmatpush.msra.mxu2 %v1274_v34  ;;  %228 = vmatpush.msra.mxu0 %v205_v33  ;;  %v125_v5 = vld [vmem:[#allocation2 + $0x20] sm:$0xff]  ;;  %v131_v27 = vld [vmem:[#allocation2 + $0x50] sm:$0xff]  ;;  %v180_v30 = vld [vmem:[#allocation5 + $0x58] sm:$0xff] }
  0x34   :  { %341 = vmatpush.msra.mxu1 %v1277_v35  ;;  %897 = vmatpush.msra.mxu3 %v204_v36  ;;  %v177_v18 = vld [vmem:[#allocation5 + $0x40] sm:$0xff] }
  0x35   :  { %503 = vmatpush.msra.mxu2 %v1280_v37  ;;  %229 = vmatpush.msra.mxu0 %v204_v36  ;;  %v455_v33 = vld [vmem:[#allocation7 + $0x60] sm:$0xff]  ;;  %v150_v36 = vld [vmem:[#allocation2 + $0xe8] sm:$0xff] }
  0x36   :  { %342 = vmatpush.msra.mxu1 %v1283_v38  ;;  %898 = vmatpush.msra.mxu3 %v203_v39 }
  0x37   :  { %504 = vmatpush.msra.mxu2 %v1286_v40  ;;  %230 = vmatpush.msra.mxu0 %v203_v39  ;;  %v134_v39 = vld [vmem:[#allocation2 + $0x68] sm:$0xff] }
  0x38   :  { %343 = vmatpush.msra.mxu1 %v1289_v41  ;;  %899 = vmatpush.msra.mxu3 %v202_v42 }
  0x39   :  { %505 = vmatpush.msra.mxu2 %v1292_v43  ;;  %231 = vmatpush.msra.mxu0 %v202_v42  ;;  %v183_v42 = vld [vmem:[#allocation5 + $0x70] sm:$0xff] }
  0x3a   :  { %344 = vmatpush.msra.mxu1 %v154_v44  ;;  %900 = vmatpush.msra.mxu3 %v201_v45 }
  0x3b   :  { %506 = vmatpush.msra.mxu2 %v1296_v46  ;;  %305 = vmatmul.f32.vlgmr.msra.gmra.mxu3 %v193_v47  ;;  %v136_v47 = vld [vmem:[#allocation2 + $0x78] sm:$0xff] }
  0x3c   :  { %507 = vmatmul.f32.vlgmr.msra.gmra.mxu2 %v443_v48  ;;  %901 = vmatpush.msrb.mxu3 %v1215_v4  ;;  %v173_v4 = vld [vmem:[#allocation5 + $0x20] sm:$0xff] }
  0x3d   :  { %232 = vmatpush.msra.mxu0 %v201_v45  ;;  %345 = vmatpush.msra.mxu1 %v153_v49  ;;  %v458_v45 = vld [vmem:[#allocation7 + $0x78] sm:$0xff]  ;;  %v459_v48 = vld [vmem:[#allocation7 + $0x80] sm:$0xff] }
  0x3e   :  { %233 = vmatmul.f32.vlgmr.msra.gmra.mxu0 %v169_v50  ;;  %902 = vmatpush.msrb.mxu3 %v1220_v7  ;;  %v198_v7 = vld [vmem:[#allocation5 + $0xe8] sm:$0xff] }
  0x3f   :  { %346 = vmatmul.f32.vlgmr.msra.gmra.mxu1 %v121_v51  ;;  %v185_v51 = vld [vmem:[#allocation5 + $0x80] sm:$0xff] }
  0x40   :  { %903 = vmatpush.msrb.mxu3 %v1223_v8  ;;  %v448_v8 = vld [vmem:[#allocation7 + $0x28] sm:$0xff] }
  0x42   :  { %904 = vmatpush.msrb.mxu3 %v1229_v11  ;;  %v126_v11 = vld [vmem:[#allocation2 + $0x28] sm:$0xff] }
  0x43   :  { %308 = vmatmul.f32.gmra.mxu3 %v194_v52 }
  0x44   :  { %510 = vmatmul.f32.gmra.mxu2 %v444_v53  ;;  %905 = vmatpush.msrb.mxu3 %v1235_v14  ;;  %v176_v14 = vld [vmem:[#allocation5 + $0x38] sm:$0xff]  ;;  %v137_v53 = vld [vmem:[#allocation2 + $0x80] sm:$0xff] }
  0x46   :  { %236 = vmatmul.f32.gmra.mxu0 %v170_v54  ;;  %906 = vmatpush.msrb.mxu3 %v1241_v17  ;;  %v451_v17 = vld [vmem:[#allocation7 + $0x40] sm:$0xff] }
  0x47   :  { %349 = vmatmul.f32.gmra.mxu1 %v122_v55 }
  0x48   :  { %907 = vmatpush.msrb.mxu3 %v1247_v20  ;;  %v146_v20 = vld [vmem:[#allocation2 + $0xc8] sm:$0xff] }
  0x4a   :  { %908 = vmatpush.msrb.mxu3 %v1253_v23  ;;  %v130_v23 = vld [vmem:[#allocation2 + $0x48] sm:$0xff] }
  0x4b   :  { %311 = vmatmul.f32.gmra.mxu3 %v195_v56 }
  0x4c   :  { %513 = vmatmul.f32.gmra.mxu2 %v445_v57  ;;  %909 = vmatpush.msrb.mxu3 %v1259_v26  ;;  %v179_v26 = vld [vmem:[#allocation5 + $0x50] sm:$0xff]  ;;  %v460_v57 = vld [vmem:[#allocation7 + $0x88] sm:$0xff] }
  0x4e   :  { %239 = vmatmul.f32.gmra.mxu0 %v171_v58  ;;  %910 = vmatpush.msrb.mxu3 %v1265_v29  ;;  %v454_v29 = vld [vmem:[#allocation7 + $0x58] sm:$0xff]  ;;  %v468_v58 = vld [vmem:[#allocation7 + $0xc8] sm:$0xff] }
  0x4f   :  { %352 = vmatmul.f32.gmra.mxu1 %v123_v59 }
  0x50   :  { %911 = vmatpush.msrb.mxu3 %v1271_v32  ;;  %v149_v32 = vld [vmem:[#allocation2 + $0xe0] sm:$0xff] }
  0x52   :  { %912 = vmatpush.msrb.mxu3 %v1277_v35  ;;  %v133_v35 = vld [vmem:[#allocation2 + $0x60] sm:$0xff] }
  0x53   :  { %314 = vmatmul.f32.gmra.mxu3 %v196_v60  ;;  %v186_v60 = vld [vmem:[#allocation5 + $0x88] sm:$0xff] }
  0x54   :  { %516 = vmatmul.f32.gmra.mxu2 %v446_v61  ;;  %913 = vmatpush.msrb.mxu3 %v1283_v38  ;;  %v182_v38 = vld [vmem:[#allocation5 + $0x68] sm:$0xff] }
  0x56   :  { %242 = vmatmul.f32.gmra.mxu0 %v172_v62  ;;  %914 = vmatpush.msrb.mxu3 %v1289_v41  ;;  %v457_v41 = vld [vmem:[#allocation7 + $0x70] sm:$0xff]  ;;  %v1335_v62 = vld [vmem:[%s1424_s6] ss:$0 sm:$0xff]  ;;  %s1131_s6 = smov [#allocation13]  }
  0x57   :  { %355 = vmatmul.f32.gmra.mxu1 %v124_v63  ;;  %s772_s29 = sshll.u32 %s1131_s6, 4  ;;  %s773_s29 = int_to_ptr.vmem [resolvable:$true] %s772_s29 }
  0x58   :  { %915 = vmatpush.msrb.mxu3 %v154_v44  ;;  %v152_v44 = vld [vmem:[#allocation2 + $0xf8] sm:$0xff] }
  0x5a   :  { %916 = vmatpush.msrb.mxu3 %v153_v49  ;;  %v467_v49 = vld [vmem:[#allocation7 + $0xc0] sm:$0xff] }
  0x5b   :  { %317 = vmatmul.f32.gmra.mxu3 %v197_v0  ;;  %v138_v0 = vld [vmem:[#allocation2 + $0x88] sm:$0xff] }
  0x5c   :  { %519 = vmatmul.f32.gmra.mxu2 %v447_v2  ;;  %917 = vmatpush.msra.mxu3 %v1210_v1  ;;  %v199_v1 = vld [vmem:[#allocation5 + $0xf0] sm:$0xff] }
  0x5e   :  { %245 = vmatmul.f32.gmra.mxu0 %v173_v4  ;;  %918 = vmatpush.msra.mxu3 %v1213_v3  ;;  %v175_v3 = vld [vmem:[#allocation5 + $0x30] sm:$0xff] }
  0x5f   :  { %358 = vmatmul.f32.gmra.mxu1 %v125_v5 }
  0x60   :  { %919 = vmatpush.msra.mxu3 %v1218_v6  ;;  %v127_v6 = vld [vmem:[#allocation2 + $0x30] sm:$0xff] }
  0x62   :  { %920 = vmatpush.msra.mxu3 %v1226_v10  ;;  %v200_v10 = vld [vmem:[#allocation5 + $0xf8] sm:$0xff] }
  0x63   :  { %320 = vmatmul.f32.gmra.mxu3 %v198_v7 }
  0x64   :  { %522 = vmatmul.f32.gmra.mxu2 %v448_v8  ;;  %921 = vmatpush.msra.mxu3 %v1232_v13  ;;  %v450_v13 = vld [vmem:[#allocation7 + $0x38] sm:$0xff] }
  0x66   :  { %248 = vmatmul.f32.gmra.mxu0 %v174_v9  ;;  %922 = vmatpush.msra.mxu3 %v1238_v16  ;;  %v145_v16 = vld [vmem:[#allocation2 + $0xc0] sm:$0xff]  ;;  %v461_v9 = vld [vmem:[#allocation7 + $0x90] sm:$0xff] }
  0x67   :  { %361 = vmatmul.f32.gmra.mxu1 %v126_v11  ;;  %v469_v11 = vld [vmem:[#allocation7 + $0xd0] sm:$0xff] }
  0x68   :  { %923 = vmatpush.msra.mxu3 %v1244_v19  ;;  %v129_v19 = vld [vmem:[#allocation2 + $0x40] sm:$0xff] }
  0x6a   :  { %924 = vmatpush.msra.mxu3 %v1250_v22  ;;  %v178_v22 = vld [vmem:[#allocation5 + $0x48] sm:$0xff] }
  0x6b   :  { %323 = vmatmul.f32.gmra.mxu3 %v199_v1 }
  0x6c   :  { %525 = vmatmul.f32.gmra.mxu2 %v449_v12  ;;  %925 = vmatpush.msra.mxu3 %v1256_v25  ;;  %v453_v25 = vld [vmem:[#allocation7 + $0x50] sm:$0xff] }
  0x6e   :  { %251 = vmatmul.f32.gmra.mxu0 %v175_v3  ;;  %926 = vmatpush.msra.mxu3 %v1262_v28  ;;  %v148_v28 = vld [vmem:[#allocation2 + $0xd8] sm:$0xff]  ;;  %v187_v3 = vld [vmem:[#allocation5 + $0x90] sm:$0xff] }
  0x6f   :  { %364 = vmatmul.f32.gmra.mxu1 %v127_v6 }
  0x70   :  { %927 = vmatpush.msra.mxu3 %v1268_v31  ;;  %v132_v31 = vld [vmem:[#allocation2 + $0x58] sm:$0xff] }
  0x72   :  { %928 = vmatpush.msra.mxu3 %v1274_v34  ;;  %v181_v34 = vld [vmem:[#allocation5 + $0x60] sm:$0xff] }
  0x73   :  { %326 = vmatmul.f32.gmra.mxu3 %v200_v10 }
  0x74   :  { %528 = vmatmul.f32.gmra.mxu2 %v450_v13  ;;  %929 = vmatpush.msra.mxu3 %v1280_v37  ;;  %v456_v37 = vld [vmem:[#allocation7 + $0x68] sm:$0xff] }
  0x76   :  { %254 = vmatmul.f32.gmra.mxu0 %v176_v14  ;;  %930 = vmatpush.msra.mxu3 %v1286_v40  ;;  %v151_v40 = vld [vmem:[#allocation2 + $0xf0] sm:$0xff] }
  0x77   :  { %367 = vmatmul.f32.gmra.mxu1 %v128_v15  ;;  %v139_v14 = vld [vmem:[#allocation2 + $0x90] sm:$0xff] }
  0x78   :  { %931 = vmatpush.msra.mxu3 %v1292_v43  ;;  %v135_v43 = vld [vmem:[#allocation2 + $0x70] sm:$0xff] }
  0x7a   :  { %932 = vmatpush.msra.mxu3 %v1296_v46  ;;  %v184_v46 = vld [vmem:[#allocation5 + $0x78] sm:$0xff] }
  0x7b   :  { %418 = vmatmul.f32.vlgmr.msrb.gmra.mxu3 %v145_v16 }
  0x7c   :  { %531 = vmatmul.f32.gmra.mxu2 %v451_v17 }
  0x7e   :  { %257 = vmatmul.f32.gmra.mxu0 %v177_v18 }
  0x7f   :  { %370 = vmatmul.f32.gmra.mxu1 %v129_v19  ;;  %v462_v19 = vld [vmem:[#allocation7 + $0x98] sm:$0xff] }
  0x83   :  { %421 = vmatmul.f32.gmra.mxu3 %v146_v20  ;;  %v470_v20 = vld [vmem:[#allocation7 + $0xd8] sm:$0xff] }
  0x84   :  { %534 = vmatmul.f32.gmra.mxu2 %v452_v21 }
  0x86   :  { %260 = vmatmul.f32.gmra.mxu0 %v178_v22  ;;  %v188_v22 = vld [vmem:[#allocation5 + $0x98] sm:$0xff] }
  0x87   :  { %373 = vmatmul.f32.gmra.mxu1 %v130_v23 }
  0x8b   :  { %424 = vmatmul.f32.gmra.mxu3 %v147_v24 }
  0x8c   :  { %537 = vmatmul.f32.gmra.mxu2 %v453_v25  ;;  %v140_v25 = vld [vmem:[#allocation2 + $0x98] sm:$0xff] }
  0x8e   :  { %263 = vmatmul.f32.gmra.mxu0 %v179_v26 }
  0x8f   :  { %376 = vmatmul.f32.gmra.mxu1 %v131_v27 }
  0x93   :  { %427 = vmatmul.f32.gmra.mxu3 %v148_v28 }
  0x94   :  { %540 = vmatmul.f32.gmra.mxu2 %v454_v29 }
  0x96   :  { %266 = vmatmul.f32.gmra.mxu0 %v180_v30 }
  0x97   :  { %379 = vmatmul.f32.gmra.mxu1 %v132_v31  ;;  %v463_v31 = vld [vmem:[#allocation7 + $0xa0] sm:$0xff] }
  0x9b   :  { %430 = vmatmul.f32.gmra.mxu3 %v149_v32  ;;  %v471_v32 = vld [vmem:[#allocation7 + $0xe0] sm:$0xff] }
  0x9c   :  { %543 = vmatmul.f32.gmra.mxu2 %v455_v33 }
  0x9e   :  { %269 = vmatmul.f32.gmra.mxu0 %v181_v34 }
  0x9f   :  { %382 = vmatmul.f32.gmra.mxu1 %v133_v35  ;;  %v189_v35 = vld [vmem:[#allocation5 + $0xa0] sm:$0xff] }
  0xa3   :  { %433 = vmatmul.f32.gmra.mxu3 %v150_v36 }
  0xa4   :  { %546 = vmatmul.f32.gmra.mxu2 %v456_v37 }
  0xa6   :  { %272 = vmatmul.f32.gmra.mxu0 %v182_v38 }
  0xa7   :  { %385 = vmatmul.f32.gmra.mxu1 %v134_v39  ;;  %v141_v39 = vld [vmem:[#allocation2 + $0xa0] sm:$0xff] }
  0xab   :  { %436 = vmatmul.f32.gmra.mxu3 %v151_v40 }
  0xac   :  { %549 = vmatmul.f32.gmra.mxu2 %v457_v41 }
  0xae   :  { %275 = vmatmul.f32.gmra.mxu0 %v183_v42 }
  0xaf   :  { %388 = vmatmul.f32.gmra.mxu1 %v135_v43 }
  0xb3   :  { %439 = vmatmul.f32.gmra.mxu3 %v152_v44  ;;  %v464_v44 = vld [vmem:[#allocation7 + $0xa8] sm:$0xff] }
  0xb4   :  { %552 = vmatmul.f32.gmra.mxu2 %v458_v45  ;;  %v472_v45 = vld [vmem:[#allocation7 + $0xe8] sm:$0xff] }
  0xb6   :  { %278 = vmatmul.f32.gmra.mxu0 %v184_v46 }
  0xb7   :  { %391 = vmatmul.f32.gmra.mxu1 %v136_v47  ;;  %v190_v47 = vld [vmem:[#allocation5 + $0xa8] sm:$0xff] }
  0xbb   :  { %v234_v50 = vpop.f32.mrf.mxu0  ;;  %579 = vmatmul.f32.vlgmr.msra.gmra.mxu3 %v467_v49 }
  0xbc   :  { %555 = vmatmul.f32.gmra.mxu2 %v459_v48  ;;  %v347_v52 = vpop.f32.mrf.mxu1 }
  0xbd   :  { %v348_v56 = vadd.f32 %v347_v52, %v234_v50  ;;  %v142_v50 = vld [vmem:[#allocation2 + $0xa8] sm:$0xff] }
  0xbe   :  { %281 = vmatmul.f32.gmra.mxu0 %v185_v51  ;;  %v1330_v54 = vpop.f32.mrf.mxu3 }
  0xbf   :  { %v508_v55 = vpop.f32.mrf.mxu2  ;;  %394 = vmatmul.f32.gmra.mxu1 %v137_v53 }
  0xc0   :  { %v604_v61 = vadd.f32 %v508_v55, %v348_v56 }
  0xc2   :  { %v640_v7 = vadd.f32 %v1335_v62, %v604_v61  ;;  %v191_v61 = vld [vmem:[#allocation5 + $0xb0] sm:$0xff] }
  0xc3   :  { %v237_v59 = vpop.f32.mrf.mxu0  ;;  %582 = vmatmul.f32.gmra.mxu3 %v468_v58  ;;  %v473_v58 = vld [vmem:[#allocation7 + $0xf0] sm:$0xff] }
  0xc4   :  { %558 = vmatmul.f32.gmra.mxu2 %v460_v57  ;;  %v350_v63 = vpop.f32.mrf.mxu1  ;;  %v672_v6 = vmax.f32 %v640_v7, 0.0  ;;  %v465_v57 = vld [vmem:[#allocation7 + $0xb0] sm:$0xff] }
  0xc5   :  { %v351_v2 = vadd.f32 %v350_v63, %v237_v59 }
  0xc6   :  { %284 = vmatmul.f32.gmra.mxu0 %v186_v60  ;;  %v1337_v4 = vpop.f32.mrf.mxu3 }
  0xc7   :  { %v511_v5 = vpop.f32.mrf.mxu2  ;;  %397 = vmatmul.f32.gmra.mxu1 %v138_v0 }
  0xc8   :  { %v605_v8 = vadd.f32 %v511_v5, %v351_v2  ;;  %v143_v5 = vld [vmem:[#allocation2 + $0xb0] sm:$0xff] }
  0xca   :  { %v641_v1 = vadd.f32 %v1335_v62, %v605_v8 }
  0xcb   :  { %v240_v12 = vpop.f32.mrf.mxu0  ;;  %585 = vmatmul.f32.gmra.mxu3 %v469_v11 }
  0xcc   :  { %v673_v10 = vmax.f32 %v641_v1, 0.0  ;;  %561 = vmatmul.f32.gmra.mxu2 %v461_v9  ;;  %v353_v13 = vpop.f32.mrf.mxu1  ;;  %v466_v1 = vld [vmem:[#allocation7 + $0xb8] sm:$0xff] }
  0xcd   :  { %v354_v18 = vadd.f32 %v353_v13, %v240_v12  ;;  %v474_v12 = vld [vmem:[#allocation7 + $0xf8] sm:$0xff] }
  0xce   :  { %v793_v15 = vpack.c.bf16 %v673_v10, %v672_v6  ;;  %287 = vmatmul.f32.gmra.mxu0 %v187_v3  ;;  %v1341_v16 = vpop.f32.mrf.mxu3  ;;  %v192_v6 = vld [vmem:[#allocation5 + $0xb8] sm:$0xff] }
  0xcf   :  { %v514_v17 = vpop.f32.mrf.mxu2  ;;  %400 = vmatmul.f32.gmra.mxu1 %v139_v14  ;;  %v144_v14 = vld [vmem:[#allocation2 + $0xb8] sm:$0xff] }
  0xd0   :  { %794 = vst [vmem:[#allocation13] sm:$0xff] %v793_v15   ;;  %v606_v23 = vadd.f32 %v514_v17, %v354_v18 }
  0xd2   :  { %v642_v29 = vadd.f32 %v1335_v62, %v606_v23 }
  0xd3   :  { %v243_v21 = vpop.f32.mrf.mxu0  ;;  %588 = vmatmul.f32.gmra.mxu3 %v470_v20 }
  0xd4   :  { %564 = vmatmul.f32.gmra.mxu2 %v462_v19  ;;  %v356_v24 = vpop.f32.mrf.mxu1  ;;  %v674_v36 = vmax.f32 %v642_v29, 0.0 }
  0xd5   :  { %v357_v26 = vadd.f32 %v356_v24, %v243_v21 }
  0xd6   :  { %290 = vmatmul.f32.gmra.mxu0 %v188_v22  ;;  %v1343_v27 = vpop.f32.mrf.mxu3 }
  0xd7   :  { %v517_v28 = vpop.f32.mrf.mxu2  ;;  %403 = vmatmul.f32.gmra.mxu1 %v140_v25 }
  0xd8   :  { %v607_v30 = vadd.f32 %v517_v28, %v357_v26 }
  0xda   :  { %v643_v33 = vadd.f32 %v1335_v62, %v607_v30 }
  0xdb   :  { %v246_v34 = vpop.f32.mrf.mxu0  ;;  %591 = vmatmul.f32.gmra.mxu3 %v471_v32 }
  0xdc   :  { %v675_v37 = vmax.f32 %v643_v33, 0.0  ;;  %567 = vmatmul.f32.gmra.mxu2 %v463_v31  ;;  %v359_v38 = vpop.f32.mrf.mxu1 }
  0xdd   :  { %v360_v43 = vadd.f32 %v359_v38, %v246_v34 }
  0xde   :  { %v798_v40 = vpack.c.bf16 %v675_v37, %v674_v36  ;;  %293 = vmatmul.f32.gmra.mxu0 %v189_v35  ;;  %v1347_v41 = vpop.f32.mrf.mxu3 }
  0xdf   :  { %v520_v42 = vpop.f32.mrf.mxu2  ;;  %406 = vmatmul.f32.gmra.mxu1 %v141_v39 }
  0xe0   :  { %870 = vst [vmem:[#allocation13 + $0x8] sm:$0xff] %v798_v40   ;;  %v608_v48 = vadd.f32 %v520_v42, %v360_v43 }
  0xe2   :  { %v644_v55 = vadd.f32 %v1335_v62, %v608_v48 }
  0xe3   :  { %v249_v46 = vpop.f32.mrf.mxu0  ;;  %594 = vmatmul.f32.gmra.mxu3 %v472_v45 }
  0xe4   :  { %570 = vmatmul.f32.gmra.mxu2 %v464_v44  ;;  %v362_v49 = vpop.f32.mrf.mxu1  ;;  %v676_v63 = vmax.f32 %v644_v55, 0.0 }
  0xe5   :  { %v363_v51 = vadd.f32 %v362_v49, %v249_v46 }
  0xe6   :  { %296 = vmatmul.f32.gmra.mxu0 %v190_v47  ;;  %v1349_v52 = vpop.f32.mrf.mxu3 }
  0xe7   :  { %v523_v53 = vpop.f32.mrf.mxu2  ;;  %409 = vmatmul.f32.gmra.mxu1 %v142_v50 }
  0xe8   :  { %v609_v56 = vadd.f32 %v523_v53, %v363_v51 }
  0xea   :  { %v645_v59 = vadd.f32 %v1335_v62, %v609_v56 }
  0xeb   :  { %v252_v60 = vpop.f32.mrf.mxu0  ;;  %597 = vmatmul.f32.gmra.mxu3 %v473_v58 }
  0xec   :  { %v677_v0 = vmax.f32 %v645_v59, 0.0  ;;  %573 = vmatmul.f32.gmra.mxu2 %v465_v57  ;;  %v365_v2 = vpop.f32.mrf.mxu1 }
  0xed   :  { %v366_v11 = vadd.f32 %v365_v2, %v252_v60 }
  0xee   :  { %v803_v7 = vpack.c.bf16 %v677_v0, %v676_v63  ;;  %299 = vmatmul.f32.gmra.mxu0 %v191_v61  ;;  %v1353_v8 = vpop.f32.mrf.mxu3 }
  0xef   :  { %v526_v9 = vpop.f32.mrf.mxu2  ;;  %412 = vmatmul.f32.gmra.mxu1 %v143_v5 }
  0xf0   :  { %871 = vst [vmem:[#allocation13 + $0x10] sm:$0xff] %v803_v7   ;;  %v610_v10 = vadd.f32 %v526_v9, %v366_v11 }
  0xf2   :  { %v646_v19 = vadd.f32 %v1335_v62, %v610_v10 }
  0xf3   :  { %v255_v3 = vpop.f32.mrf.mxu0  ;;  %600 = vmatmul.f32.gmra.mxu3 %v474_v12 }
  0xf4   :  { %576 = vmatmul.f32.gmra.mxu2 %v466_v1  ;;  %v368_v13 = vpop.f32.mrf.mxu1  ;;  %v678_v23 = vmax.f32 %v646_v19, 0.0 }
  0xf5   :  { %v369_v15 = vadd.f32 %v368_v13, %v255_v3 }
  0xf6   :  { %302 = vmatmul.f32.gmra.mxu0 %v192_v6  ;;  %v1355_v17 = vpop.f32.mrf.mxu3 }
  0xf7   :  { %v529_v18 = vpop.f32.mrf.mxu2  ;;  %415 = vmatmul.f32.gmra.mxu1 %v144_v14 }
  0xf8   :  { %v611_v20 = vadd.f32 %v529_v18, %v369_v15 }
  0xfa   :  { %v647_v21 = vadd.f32 %v1335_v62, %v611_v20 }
  0xfb   :  { %v258_v22 = vpop.f32.mrf.mxu0 }
  0xfc   :  { %v679_v24 = vmax.f32 %v647_v21, 0.0  ;;  %v371_v25 = vpop.f32.mrf.mxu1 }
  0xfd   :  { %v372_v30 = vadd.f32 %v371_v25, %v258_v22 }
  0xfe   :  { %v808_v26 = vpack.c.bf16 %v679_v24, %v678_v23  ;;  %v419_v28 = vpop.f32.mrf.mxu3 }
  0xff   :  { %v532_v29 = vpop.f32.mrf.mxu2  ;;  %v1360_v31 = vadd.f32 %v419_v28, %v1330_v54 }
 0x100   :  { %872 = vst [vmem:[#allocation13 + $0x18] sm:$0xff] %v808_v26   ;;  %v612_v33 = vadd.f32 %v532_v29, %v372_v30 }
 0x102   :  { %v648_v38 = vadd.f32 %v1335_v62, %v612_v33 }
 0x103   :  { %v261_v32 = vpop.f32.mrf.mxu0 }
 0x104   :  { %v374_v34 = vpop.f32.mrf.mxu1  ;;  %v680_v43 = vmax.f32 %v648_v38, 0.0 }
 0x105   :  { %v375_v35 = vadd.f32 %v374_v34, %v261_v32 }
 0x106   :  { %v1362_v36 = vpop.f32.mrf.mxu3 }
 0x107   :  { %v535_v37 = vpop.f32.mrf.mxu2 }
 0x108   :  { %v613_v39 = vadd.f32 %v535_v37, %v375_v35 }
 0x10a   :  { %v649_v40 = vadd.f32 %v1335_v62, %v613_v39 }
 0x10b   :  { %v264_v42 = vpop.f32.mrf.mxu0 }
 0x10c   :  { %v681_v44 = vmax.f32 %v649_v40, 0.0  ;;  %v377_v45 = vpop.f32.mrf.mxu1 }
 0x10d   :  { %v378_v48 = vadd.f32 %v377_v45, %v264_v42 }
 0x10e   :  { %v813_v46 = vpack.c.bf16 %v681_v44, %v680_v43  ;;  %v425_v47 = vpop.f32.mrf.mxu3 }
 0x10f   :  { %v538_v54 = vpop.f32.mrf.mxu2  ;;  %v1367_v49 = vadd.f32 %v425_v47, %v1341_v16 }
 0x110   :  { %873 = vst [vmem:[#allocation13 + $0x20] sm:$0xff] %v813_v46   ;;  %v614_v51 = vadd.f32 %v538_v54, %v378_v48 }
 0x112   :  { %v650_v58 = vadd.f32 %v1335_v62, %v614_v51 }
 0x113   :  { %v267_v50 = vpop.f32.mrf.mxu0 }
 0x114   :  { %v380_v53 = vpop.f32.mrf.mxu1  ;;  %v682_v63 = vmax.f32 %v650_v58, 0.0 }
 0x115   :  { %v381_v55 = vadd.f32 %v380_v53, %v267_v50  ;;  %v423_v53 = vadd.f32 %v1362_v36, %v1337_v4 }
 0x116   :  { %v1369_v56 = vpop.f32.mrf.mxu3 }
 0x117   :  { %v541_v57 = vpop.f32.mrf.mxu2 }
 0x118   :  { %v615_v59 = vadd.f32 %v541_v57, %v381_v55 }
 0x11a   :  { %v651_v60 = vadd.f32 %v1335_v62, %v615_v59 }
 0x11b   :  { %v270_v61 = vpop.f32.mrf.mxu0 }
 0x11c   :  { %v683_v0 = vmax.f32 %v651_v60, 0.0  ;;  %v383_v2 = vpop.f32.mrf.mxu1 }
 0x11d   :  { %v384_v9 = vadd.f32 %v383_v2, %v270_v61 }
 0x11e   :  { %v818_v5 = vpack.c.bf16 %v683_v0, %v682_v63  ;;  %v431_v7 = vpop.f32.mrf.mxu3 }
 0x11f   :  { %v544_v16 = vpop.f32.mrf.mxu2  ;;  %v1374_v11 = vadd.f32 %v431_v7, %v1347_v41 }
 0x120   :  { %874 = vst [vmem:[#allocation13 + $0x28] sm:$0xff] %v818_v5   ;;  %v616_v12 = vadd.f32 %v544_v16, %v384_v9 }
 0x122   :  { %v652_v14 = vadd.f32 %v1335_v62, %v616_v12 }
 0x123   :  { %v273_v1 = vpop.f32.mrf.mxu0 }
 0x124   :  { %v386_v3 = vpop.f32.mrf.mxu1  ;;  %v684_v20 = vmax.f32 %v652_v14, 0.0 }
 0x125   :  { %v387_v6 = vadd.f32 %v386_v3, %v273_v1 }
 0x126   :  { %v1376_v10 = vpop.f32.mrf.mxu3 }
 0x127   :  { %v547_v13 = vpop.f32.mrf.mxu2 }
 0x128   :  { %v617_v15 = vadd.f32 %v547_v13, %v387_v6 }
 0x12a   :  { %v653_v18 = vadd.f32 %v1335_v62, %v617_v15 }
 0x12b   :  { %v276_v19 = vpop.f32.mrf.mxu0 }
 0x12c   :  { %v685_v21 = vmax.f32 %v653_v18, 0.0  ;;  %v389_v22 = vpop.f32.mrf.mxu1 }
 0x12d   :  { %v390_v25 = vadd.f32 %v389_v22, %v276_v19  ;;  %v429_v19 = vadd.f32 %v1369_v56, %v1343_v27 }
 0x12e   :  { %v823_v23 = vpack.c.bf16 %v685_v21, %v684_v20  ;;  %v437_v24 = vpop.f32.mrf.mxu3 }
 0x12f   :  { %v550_v41 = vpop.f32.mrf.mxu2  ;;  %v1381_v26 = vadd.f32 %v437_v24, %v1353_v8 }
 0x130   :  { %875 = vst [vmem:[#allocation13 + $0x30] sm:$0xff] %v823_v23   ;;  %v618_v29 = vadd.f32 %v550_v41, %v390_v25 }
 0x132   :  { %v654_v35 = vadd.f32 %v1335_v62, %v618_v29 }
 0x133   :  { %v279_v28 = vpop.f32.mrf.mxu0 }
 0x134   :  { %v392_v30 = vpop.f32.mrf.mxu1  ;;  %v686_v40 = vmax.f32 %v654_v35, 0.0 }
 0x135   :  { %v393_v32 = vadd.f32 %v392_v30, %v279_v28 }
 0x136   :  { %v1383_v33 = vpop.f32.mrf.mxu3 }
 0x137   :  { %v553_v34 = vpop.f32.mrf.mxu2 }
 0x138   :  { %v619_v37 = vadd.f32 %v553_v34, %v393_v32 }
 0x13a   :  { %v655_v38 = vadd.f32 %v1335_v62, %v619_v37 }
 0x13b   :  { %v282_v39 = vpop.f32.mrf.mxu0 }
 0x13c   :  { %v687_v42 = vmax.f32 %v655_v38, 0.0  ;;  %v395_v43 = vpop.f32.mrf.mxu1 }
 0x13d   :  { %v396_v46 = vadd.f32 %v395_v43, %v282_v39 }
 0x13e   :  { %v828_v44 = vpack.c.bf16 %v687_v42, %v686_v40  ;;  %v580_v8 = vpop.f32.mrf.mxu3 }
 0x13f   :  { %v556_v45 = vpop.f32.mrf.mxu2  ;;  %v628_v48 = vadd.f32 %v580_v8, %v1360_v31  ;;  %v435_v8 = vadd.f32 %v1376_v10, %v1349_v52 }
 0x140   :  { %876 = vst [vmem:[#allocation13 + $0x38] sm:$0xff] %v828_v44   ;;  %v620_v54 = vadd.f32 %v556_v45, %v396_v46 }
 0x141   :  { %v664_v59 = vadd.f32 %v1335_v62, %v628_v48 }
 0x142   :  { %v656_v58 = vadd.f32 %v1335_v62, %v620_v54 }
 0x143   :  { %v285_v47 = vpop.f32.mrf.mxu0  ;;  %v696_v31 = vmax.f32 %v664_v59, 0.0 }
 0x144   :  { %v398_v50 = vpop.f32.mrf.mxu1  ;;  %v688_v5 = vmax.f32 %v656_v58, 0.0 }
 0x145   :  { %v399_v51 = vadd.f32 %v398_v50, %v285_v47 }
 0x146   :  { %v583_v57 = vpop.f32.mrf.mxu3 }
 0x147   :  { %v559_v55 = vpop.f32.mrf.mxu2  ;;  %v629_v61 = vadd.f32 %v583_v57, %v423_v53 }
 0x148   :  { %v621_v60 = vadd.f32 %v559_v55, %v399_v51 }
 0x149   :  { %v665_v0 = vadd.f32 %v1335_v62, %v629_v61 }
 0x14a   :  { %v657_v63 = vadd.f32 %v1335_v62, %v621_v60 }
 0x14b   :  { %v288_v2 = vpop.f32.mrf.mxu0  ;;  %v697_v16 = vmax.f32 %v665_v0, 0.0 }
 0x14c   :  { %v689_v7 = vmax.f32 %v657_v63, 0.0  ;;  %v401_v9 = vpop.f32.mrf.mxu1 }
 0x14d   :  { %v853_v4 = vpack.c.bf16 %v697_v16, %v696_v31  ;;  %v402_v3 = vadd.f32 %v401_v9, %v288_v2 }
 0x14e   :  { %v833_v1 = vpack.c.bf16 %v689_v7, %v688_v5  ;;  %v586_v12 = vpop.f32.mrf.mxu3 }
 0x14f   :  { %v562_v36 = vpop.f32.mrf.mxu2  ;;  %881 = vst [vmem:[#allocation13 + $0x60] sm:$0xff] %v853_v4   ;;  %v630_v14 = vadd.f32 %v586_v12, %v1367_v49 }
 0x150   :  { %877 = vst [vmem:[#allocation13 + $0x40] sm:$0xff] %v833_v1   ;;  %v622_v13 = vadd.f32 %v562_v36, %v402_v3  ;;  %v441_v1 = vadd.f32 %v1383_v33, %v1355_v17 }
 0x151   :  { %v666_v23 = vadd.f32 %v1335_v62, %v630_v14 }
 0x152   :  { %v658_v22 = vadd.f32 %v1335_v62, %v622_v13 }
 0x153   :  { %v291_v6 = vpop.f32.mrf.mxu0  ;;  %v698_v49 = vmax.f32 %v666_v23, 0.0 }
 0x154   :  { %v404_v15 = vpop.f32.mrf.mxu1  ;;  %v690_v30 = vmax.f32 %v658_v22, 0.0 }
 0x155   :  { %v405_v18 = vadd.f32 %v404_v15, %v291_v6 }
 0x156   :  { %v589_v21 = vpop.f32.mrf.mxu3 }
 0x157   :  { %v565_v20 = vpop.f32.mrf.mxu2  ;;  %v631_v41 = vadd.f32 %v589_v21, %v429_v19 }
 0x158   :  { %v623_v24 = vadd.f32 %v565_v20, %v405_v18 }
 0x159   :  { %v667_v28 = vadd.f32 %v1335_v62, %v631_v41 }
 0x15a   :  { %v659_v25 = vadd.f32 %v1335_v62, %v623_v24 }
 0x15b   :  { %v294_v29 = vpop.f32.mrf.mxu0  ;;  %v699_v34 = vmax.f32 %v667_v28, 0.0 }
 0x15c   :  { %v691_v32 = vmax.f32 %v659_v25, 0.0  ;;  %v407_v35 = vpop.f32.mrf.mxu1 }
 0x15d   :  { %v858_v27 = vpack.c.bf16 %v699_v34, %v698_v49  ;;  %v408_v39 = vadd.f32 %v407_v35, %v294_v29 }
 0x15e   :  { %v838_v37 = vpack.c.bf16 %v691_v32, %v690_v30  ;;  %v592_v38 = vpop.f32.mrf.mxu3 }
 0x15f   :  { %v568_v56 = vpop.f32.mrf.mxu2  ;;  %882 = vst [vmem:[#allocation13 + $0x68] sm:$0xff] %v858_v27   ;;  %v632_v43 = vadd.f32 %v592_v38, %v1374_v11 }
 0x160   :  { %878 = vst [vmem:[#allocation13 + $0x48] sm:$0xff] %v838_v37   ;;  %v624_v42 = vadd.f32 %v568_v56, %v408_v39 }
 0x161   :  { %v668_v48 = vadd.f32 %v1335_v62, %v632_v43 }
 0x162   :  { %v660_v54 = vadd.f32 %v1335_v62, %v624_v42 }
 0x163   :  { %v297_v40 = vpop.f32.mrf.mxu0  ;;  %v700_v11 = vmax.f32 %v668_v48, 0.0 }
 0x164   :  { %v410_v44 = vpop.f32.mrf.mxu1  ;;  %v692_v58 = vmax.f32 %v660_v54, 0.0 }
 0x165   :  { %v411_v45 = vadd.f32 %v410_v44, %v297_v40 }
 0x166   :  { %v595_v47 = vpop.f32.mrf.mxu3 }
 0x167   :  { %v571_v46 = vpop.f32.mrf.mxu2  ;;  %v633_v51 = vadd.f32 %v595_v47, %v435_v8 }
 0x168   :  { %v625_v50 = vadd.f32 %v571_v46, %v411_v45 }
 0x169   :  { %v669_v55 = vadd.f32 %v1335_v62, %v633_v51 }
 0x16a   :  { %v661_v53 = vadd.f32 %v1335_v62, %v625_v50 }
 0x16b   :  { %v300_v57 = vpop.f32.mrf.mxu0  ;;  %v701_v60 = vmax.f32 %v669_v55, 0.0 }
 0x16c   :  { %v693_v59 = vmax.f32 %v661_v53, 0.0  ;;  %v413_v61 = vpop.f32.mrf.mxu1 }
 0x16d   :  { %v863_v52 = vpack.c.bf16 %v701_v60, %v700_v11  ;;  %v414_v2 = vadd.f32 %v413_v61, %v300_v57 }
 0x16e   :  { %v843_v63 = vpack.c.bf16 %v693_v59, %v692_v58  ;;  %v598_v0 = vpop.f32.mrf.mxu3 }
 0x16f   :  { %v574_v10 = vpop.f32.mrf.mxu2  ;;  %883 = vst [vmem:[#allocation13 + $0x70] sm:$0xff] %v863_v52   ;;  %v634_v7 = vadd.f32 %v598_v0, %v1381_v26 }
 0x170   :  { %879 = vst [vmem:[#allocation13 + $0x50] sm:$0xff] %v843_v63   ;;  %v626_v31 = vadd.f32 %v574_v10, %v414_v2 }
 0x171   :  { %v670_v3 = vadd.f32 %v1335_v62, %v634_v7 }
 0x172   :  { %v662_v12 = vadd.f32 %v1335_v62, %v626_v31 }
 0x173   :  { %v303_v5 = vpop.f32.mrf.mxu0  ;;  %v702_v17 = vmax.f32 %v670_v3, 0.0 }
 0x174   :  { %v416_v16 = vpop.f32.mrf.mxu1  ;;  %v694_v26 = vmax.f32 %v662_v12, 0.0 }
 0x175   :  { %v417_v9 = vadd.f32 %v416_v16, %v303_v5 }
 0x176   :  { %v601_v36 = vpop.f32.mrf.mxu3 }
 0x177   :  { %v577_v4 = vpop.f32.mrf.mxu2  ;;  %v635_v13 = vadd.f32 %v601_v36, %v441_v1 }
 0x178   :  { %v627_v6 = vadd.f32 %v577_v4, %v417_v9 }
 0x179   :  { %v671_v15 = vadd.f32 %v1335_v62, %v635_v13 }
 0x17a   :  { %v663_v14 = vadd.f32 %v1335_v62, %v627_v6 }
 0x17b   :  { %v703_v18 = vmax.f32 %v671_v15, 0.0 }
 0x17c   :  { %v695_v33 = vmax.f32 %v663_v14, 0.0 }
 0x17d   :  { %v868_v20 = vpack.c.bf16 %v703_v18, %v702_v17 }
 0x17e   :  { %v848_v19 = vpack.c.bf16 %v695_v33, %v694_v26 }
 0x17f   :  { %884 = vst [vmem:[#allocation13 + $0x78] sm:$0xff] %v868_v20  }
 0x180   :  { %880 = vst [vmem:[#allocation13 + $0x58] sm:$0xff] %v848_v19  }
 0x181   :  { %780 = dma.vmem_to_hbm [thread:$0]  %s773_s29, 2048, %s775_s9, [#allocation4], %s1132_s10, %s1132_s10, %s1133_s11  }
 0x182   :  { %1121 = dma.done.wait [#allocation4], 2048  }
 0x183   :  { %1122 = vsyncadd [#allocation4], 4294965248 }
 0x184   :  { %785 = vsyncpa [#allocation3], 1 }
 0x185   :  { %786 = vsyncpa [#allocation6], 1 }
 0x186   :  { %787 = vsyncpa [#allocation9], 1 }
 0x187   :  { %788 = vsyncpa [#allocation12], 1 }
 0x188   :  { %789 = vsyncpa [#allocation4], 1 }

</bundles_post_ra>
